<compile_context>
chip_gen: v5e
topology: v5e:2x2
jax: 0.10.0
libtpu: 0.0.40
codegen_flags: <defaults>
</compile_context>

<pallas_src>
import functools

import jax
import jax.numpy as jnp
from jax.experimental import pallas as pl
from jax.experimental.pallas import tpu as pltpu


# ~4 MiB of float32 working data per tile (the streamed HBM block is in the
# input's dtype, so it is <= this).
_TARGET_F32_TILE_ELEMS = (4 * 1024 * 1024) // 4
_VMEM_LIMIT_BYTES = 48 * 1024 * 1024


def _sum_p_logp(x, axis):
    """sum(softmax(x)*log_softmax(x)) along `axis` (keepdims), x is f32."""
    m = jnp.max(x, axis=axis, keepdims=True)
    s = x - m
    e = jnp.exp(s)
    denom = jnp.sum(e, axis=axis, keepdims=True)
    # sum(p * log p) = sum(e * s) / denom - log(denom)
    return jnp.sum(e * s, axis=axis, keepdims=True) / denom - jnp.log(denom)


def _hloss_kernel_chan_sublane(x_ref, o_ref, *, r_total, block_r, mask_r):
    """ndim>=3 path.

    x_ref: (1, C, TR) block of the (B, C, R) input; softmax axis = C (sublanes).
    o_ref: (1, 1, 1, 128) per-program partial-sum block.
    """
    x = x_ref[0].astype(jnp.float32)                      # (C, TR)
    valid = None
    if mask_r:
        j = pl.program_id(1)
        col = j * block_r + jax.lax.broadcasted_iota(jnp.int32, (1, block_r), 1)
        valid = col < r_total                             # (1, TR)
        x = jnp.where(valid, x, 0.0)                      # keep max/exp NaN-free
    plogp = _sum_p_logp(x, axis=0)                        # (1, TR)
    if mask_r:
        plogp = jnp.where(valid, plogp, 0.0)
    o_ref[...] = jnp.full(o_ref.shape, -jnp.sum(plogp), jnp.float32)


def _hloss_kernel_class_lane(x_ref, o_ref, *, m_total, block_m, mask_m):
    """ndim==2 path.

    x_ref: (TM, C) block of the (M, C) input; softmax axis = C (lanes).
    o_ref: (1, 1, 128) per-program partial-sum block.
    """
    x = x_ref[...].astype(jnp.float32)                    # (TM, C)
    valid = None
    if mask_m:
        i = pl.program_id(0)
        row = i * block_m + jax.lax.broadcasted_iota(jnp.int32, (block_m, 1), 0)
        valid = row < m_total                             # (TM, 1)
        x = jnp.where(valid, x, 0.0)
    plogp = _sum_p_logp(x, axis=1)                        # (TM, 1)
    if mask_m:
        plogp = jnp.where(valid, plogp, 0.0)
    o_ref[...] = jnp.full(o_ref.shape, -jnp.sum(plogp), jnp.float32)


def _hloss_chan_sublane(x3):
    """x3: (B, C, R), softmax over C (sublane axis in-kernel)."""
    B, C, R = x3.shape
    tr_cap = max(128, (_TARGET_F32_TILE_ELEMS // max(C, 1)) // 128 * 128)
    if R <= tr_cap:
        tr, n_r = R, 1                                    # full dim -> always legal
    else:
        tr, n_r = tr_cap, pl.cdiv(R, tr_cap)              # multiple of 128
    mask_r = (R % tr) != 0

    kernel = functools.partial(
        _hloss_kernel_chan_sublane, r_total=R, block_r=tr, mask_r=mask_r)

    partials = pl.pallas_call(
        kernel,
        out_shape=jax.ShapeDtypeStruct((B, n_r, 1, 128), jnp.float32),
        grid=(B, n_r),
        in_specs=[pl.BlockSpec((1, C, tr), lambda i, j: (i, 0, j))],
        out_specs=pl.BlockSpec((1, 1, 1, 128), lambda i, j: (i, j, 0, 0)),
        compiler_params=pltpu.CompilerParams(
            dimension_semantics=("parallel", "parallel"),
            vmem_limit_bytes=_VMEM_LIMIT_BYTES,
        ),
    )(x3)
    return jnp.sum(partials[:, :, 0, 0])


def _hloss_class_lane(x2):
    """x2: (M, C), softmax over C (lane axis in-kernel)."""
    M, C = x2.shape
    tm_cap = max(8, (_TARGET_F32_TILE_ELEMS // max(C, 1)) // 8 * 8)
    if M <= tm_cap:
        tm, n_m = M, 1                                    # full dim -> always legal
    else:
        tm, n_m = tm_cap, pl.cdiv(M, tm_cap)              # multiple of 8
    mask_m = (M % tm) != 0

    kernel = functools.partial(
        _hloss_kernel_class_lane, m_total=M, block_m=tm, mask_m=mask_m)

    partials = pl.pallas_call(
        kernel,
        out_shape=jax.ShapeDtypeStruct((n_m, 1, 128), jnp.float32),
        grid=(n_m,),
        in_specs=[pl.BlockSpec((tm, C), lambda i: (i, 0))],
        out_specs=pl.BlockSpec((1, 1, 128), lambda i: (i, 0, 0)),
        compiler_params=pltpu.CompilerParams(
            dimension_semantics=("parallel",),
            vmem_limit_bytes=_VMEM_LIMIT_BYTES,
        ),
    )(x2)
    return jnp.sum(partials[:, 0, 0])


@jax.jit
def hloss_pallas(x):
    """Entropy loss: -sum(softmax(x, axis=1) * log_softmax(x, axis=1)).

    Returns a float32 scalar (accumulation kept in f32 regardless of input
    dtype, matching the high-precision intent of the reduction).
    """
    if x.ndim < 2:
        raise ValueError("HLoss expects input with >= 2 dims (softmax over dim=1)")
    if x.ndim == 2:
        return _hloss_class_lane(x)
    B, C = x.shape[0], x.shape[1]
    R = 1
    for d in x.shape[2:]:
        R *= d
    # Free (contiguous) reshape: (B, C, *spatial) -> (B, C, R). No transpose pass.
    return _hloss_chan_sublane(x.reshape(B, C, R))


def hloss_ref(x):
    """Pure-JAX reference matching the PyTorch module."""
    x = x.astype(jnp.float32)
    p = jax.nn.softmax(x, axis=1)
    logp = jax.nn.log_softmax(x, axis=1)
    return -jnp.sum(p * logp)


if __name__ == "__main__":
    key = jax.random.PRNGKey(0)

    # NCHW-style input; softmax runs over dim=1 (channels).
    x = jax.random.normal(key, (2, 4, 16, 16), dtype=jnp.float32)
    out = jax.block_until_ready(hloss_pallas(x))
    ref = jax.block_until_ready(hloss_ref(x))
    assert jnp.allclose(out, ref, rtol=1e-4, atol=1e-4), (out, ref)

    # Also exercise the 2-D (logits) path.
    x2 = jax.random.normal(jax.random.PRNGKey(0), (8, 32), dtype=jnp.float32)
    out2 = jax.block_until_ready(hloss_pallas(x2))
    ref2 = jax.block_until_ready(hloss_ref(x2))
    assert jnp.allclose(out2, ref2, rtol=1e-4, atol=1e-4), (out2, ref2)

    print("KERNEL_OK")
</pallas_src>

<mosaic_0001>
module attributes {stable_mosaic.version = 11 : i64} {
  func.func @_hloss_kernel_chan_sublane(%arg0: i32, %arg1: i32, %arg2: memref<1x4x256xf32, #tpu.memory_space<vmem>>, %arg3: memref<1x1x1x128xf32, #tpu.memory_space<vmem>>) attributes {dimension_semantics = [#tpu.dimension_semantics<parallel>, #tpu.dimension_semantics<parallel>], iteration_bounds = array<i64: 2, 1>, scalar_prefetch = 0 : i64, scratch_operands = 0 : i64, tpu.core_type = #tpu.core_type<tc>, window_params = [{transform_indices = @transform_0, window_bounds = array<i64: 1, 4, 256>}, {transform_indices = @transform_1, window_bounds = array<i64: 1, 1, 1, 128>}]} {
    %c0 = arith.constant 0 : index
    %c0_0 = arith.constant 0 : index
    %c0_1 = arith.constant 0 : index
    %0 = vector.load %arg2[%c0, %c0_0, %c0_1] : memref<1x4x256xf32, #tpu.memory_space<vmem>>, vector<1x4x256xf32>
    %1 = vector.shape_cast %0 : vector<1x4x256xf32> to vector<4x256xf32>
    %cst = arith.constant dense<0xFF800000> : vector<256xf32>
    %2 = vector.multi_reduction <maximumf>, %1, %cst [0] : vector<4x256xf32> to vector<256xf32>
    %3 = vector.shape_cast %2 : vector<256xf32> to vector<1x256xf32>
    %4 = vector.broadcast %3 : vector<1x256xf32> to vector<4x256xf32>
    %5 = arith.subf %1, %4 : vector<4x256xf32>
    %6 = math.exp %5 : vector<4x256xf32>
    %cst_2 = arith.constant dense<0.000000e+00> : vector<256xf32>
    %7 = vector.multi_reduction <add>, %6, %cst_2 [0] : vector<4x256xf32> to vector<256xf32>
    %8 = vector.shape_cast %7 : vector<256xf32> to vector<1x256xf32>
    %9 = arith.mulf %6, %5 : vector<4x256xf32>
    %cst_3 = arith.constant dense<0.000000e+00> : vector<256xf32>
    %10 = vector.multi_reduction <add>, %9, %cst_3 [0] : vector<4x256xf32> to vector<256xf32>
    %11 = vector.shape_cast %10 : vector<256xf32> to vector<1x256xf32>
    %12 = arith.divf %11, %8 : vector<1x256xf32>
    %13 = math.log %8 : vector<1x256xf32>
    %14 = arith.subf %12, %13 : vector<1x256xf32>
    %15 = vector.shape_cast %14 : vector<1x256xf32> to vector<1x1x256xf32>
    %cst_4 = arith.constant dense<0.000000e+00> : vector<1xf32>
    %16 = vector.multi_reduction <add>, %15, %cst_4 [1, 2] : vector<1x1x256xf32> to vector<1xf32>
    %17 = vector.shape_cast %16 : vector<1xf32> to vector<1x1x1xf32>
    %18 = vector.extract %17[0, 0, 0] : f32 from vector<1x1x1xf32>
    %cst_5 = arith.constant 0.000000e+00 : f32
    %19 = arith.subf %cst_5, %18 : f32
    %20 = vector.broadcast %19 : f32 to vector<1x1x1x128xf32>
    %c0_6 = arith.constant 0 : index
    %c0_7 = arith.constant 0 : index
    %c0_8 = arith.constant 0 : index
    %c0_9 = arith.constant 0 : index
    %21 = vector.load %arg3[%c0_6, %c0_7, %c0_8, %c0_9] : memref<1x1x1x128xf32, #tpu.memory_space<vmem>>, vector<1x1x1x128xf32>
    tpu.vector_store %arg3[%c0_6, %c0_7, %c0_8, %c0_9], %20 {strides = array<i32>} : memref<1x1x1x128xf32, #tpu.memory_space<vmem>>, vector<1x1x1x128xf32>,
    return
  }
  func.func @transform_0(%arg0: i32, %arg1: i32) -> (i32, i32, i32) {
    %c0_i32 = arith.constant 0 : i32
    %c0_i32_0 = arith.constant 0 : i32
    return %arg0, %c0_i32, %arg1 : i32, i32, i32
  }
  func.func @transform_1(%arg0: i32, %arg1: i32) -> (i32, i32, i32, i32) {
    %c0_i32 = arith.constant 0 : i32
    %c0_i32_0 = arith.constant 0 : i32
    %c0_i32_1 = arith.constant 0 : i32
    return %arg0, %arg1, %c0_i32, %c0_i32_0 : i32, i32, i32, i32
  }
}

</mosaic_0001>

<bundles_post_ra>
// kernel: hloss_pallas.1
= control target key start
LH: loop header
LB: loop body
LE: loop exit
PB: predicated region body
PF: predicated region fallthrough
CT: control target
= control target key end

     0   :  { %s423_s6 = smov 0   ;;  %s425_s7 = smov 0   ;;  %s469_s0 = inlined_call_operand.vmem [shape: f32[2,4,256], index: 0, kind: input, shape index: {}]   ;;  %s470_s1 = inlined_call_operand.vmem [shape: f32[2,1,1,128], index: 1, kind: output, shape index: {}]  }
   0x1   :  { %s427_s8 = smov 0  }
   0x2 LB: > { %s23_s9 = sadd.s32 1, %s407_s7  ;;  %p347_p0 = scmp.ge.s32.totalorder %s411_s8, 1  ;;  %s411_s8 = sphi %s427_s8, %s11_s8   ;;  %s407_s7 = sphi %s425_s7, %s472_s7   ;;  %s403_s6 = sphi %s423_s6, %s471_s6  }
   0x3   : > { %p25_p1 = scmp.ge.s32.totalorder %s23_s9, 2  ;;  %p108_p2 = scmp.lt.s32.totalorder %s411_s8, 3 }
   0x5   : > { %s474_s9 = smov (%p25_p1, %s23_s9), 0  ;;  %p109_p3 = pnand %p347_p0, %p108_p2 }
   0x6   : > { %p134_p4 = scmp.lt.s32.totalorder (!%p109_p3), %s403_s6, 1 }
   0x7   : > { %112 = sbr.rel (%p109_p3) target bundleno = 279 (0x117), region = 24 }
   0xc   : > { %s476_s6 = smov (!%p134_p4, %s403_s6), 1  ;;  %vm156_vm0 = vcmask 1043456   ;;  %vm256_vm9 = vcmask 1040384  }
   0xd   : > { %s352_s10 = sshll.u32 %s476_s6, 3  ;;  %s148_s17 = scalar_lea.vmem %s470_s1, %s476_s6 }
   0xe   : > { %s141_s13 = scalar_lea.vmem %s469_s0, %s352_s10 }
   0xf   : > { %v149_v0 = vld [vmem:[%s141_s13] sm:$0xff] }
  0x10   : > { %151 = vst [vmem:[#allocation1] ss:$2 sm:$0xff] %v149_v0 }
  0x17   : > { %v152_v1 = vld.sshfl [vmem:[#allocation1] sm:$0xff pattern:$0x75316420]  ;;  %v153_v2 = vld.sshfl [vmem:[#allocation1 + $0x8] sm:$0xff pattern:$0x75316420] }
  0x18   : > { %v157_v3 = vsel %vm156_vm0, %v152_v1, -inf  ;;  %v164_v4 = vsel %vm156_vm0, %v153_v2, -inf }
  0x19   : > { %v158_v5 = vrot.slane %v157_v3, 4  ;;  %v165_v6 = vrot.slane %v164_v4, 4 }
  0x1b   : > { %v159_v7 = vmax.f32 %v157_v3, %v158_v5  ;;  %v166_v8 = vmax.f32 %v164_v4, %v165_v6 }
  0x1d   : > { %v160_v9 = vrot.slane %v159_v7, 2  ;;  %v167_v10 = vrot.slane %v166_v8, 2 }
  0x1f   : > { %v161_v11 = vmax.f32 %v159_v7, %v160_v9  ;;  %v168_v12 = vmax.f32 %v166_v8, %v167_v10 }
  0x21   : > { %v162_v13 = vrot.slane %v161_v11, 1  ;;  %v169_v14 = vrot.slane %v168_v12, 1 }
  0x23   : > { %v163_v15 = vmax.f32 %v161_v11, %v162_v13  ;;  %v170_v16 = vmax.f32 %v168_v12, %v169_v14 }
  0x25   : > { %v173_v17 = vrot.slane %v170_v16, 4 }
  0x27   : > { %v174_v18 = vsel %vm156_vm0, %v163_v15, %v173_v17 }
  0x28   : > { %v176_v19 = vsub.f32 %v149_v0, %v174_v18 }
  0x2a   : > { %v177_v20 = vmul.f32 1.442695, %v176_v19 }
  0x2c   : > { %379 = vpow2.f32 %v177_v20 }
  0x32   : > { %v380_v21 = vpop.eup %379 }
  0x33   : > { %180 = vst [vmem:[#allocation1] ss:$2 sm:$0xff] %v380_v21  ;;  %v199_v22 = vmul.f32 %v380_v21, %v176_v19 }
  0x3a   : > { %v181_v23 = vld.sshfl [vmem:[#allocation1] sm:$0xff pattern:$0x75316420]  ;;  %v182_v24 = vld.sshfl [vmem:[#allocation1 + $0x8] sm:$0xff pattern:$0x75316420] }
  0x3b   : > { %v185_v25 = vsel %vm156_vm0, %v181_v23, 0.0  ;;  %v192_v26 = vsel %vm156_vm0, %v182_v24, 0.0  ;;  %201 = vst [vmem:[#allocation1] ss:$2 sm:$0xff] %v199_v22 }
  0x3c   : > { %v186_v27 = vrot.slane %v185_v25, 4  ;;  %v193_v28 = vrot.slane %v192_v26, 4 }
  0x3e   : > { %v187_v29 = vadd.f32 %v186_v27, %v185_v25  ;;  %v194_v30 = vadd.f32 %v193_v28, %v192_v26 }
  0x40   : > { %v188_v31 = vrot.slane %v187_v29, 2  ;;  %v195_v32 = vrot.slane %v194_v30, 2 }
  0x42   : > { %v189_v33 = vadd.f32 %v188_v31, %v187_v29  ;;  %v196_v34 = vadd.f32 %v195_v32, %v194_v30  ;;  %v202_v35 = vld.sshfl [vmem:[#allocation1] sm:$0xff pattern:$0x75316420]  ;;  %v203_v36 = vld.sshfl [vmem:[#allocation1 + $0x8] sm:$0xff pattern:$0x75316420] }
  0x43   : > { %v206_v37 = vsel %vm156_vm0, %v202_v35, 0.0  ;;  %v213_v38 = vsel %vm156_vm0, %v203_v36, 0.0 }
  0x44   : > { %v190_v39 = vrot.slane %v189_v33, 1  ;;  %v197_v40 = vrot.slane %v196_v34, 1  ;;  %v207_v41 = vrot.slane %v206_v37, 4  ;;  %v214_v42 = vrot.slane %v213_v38, 4 }
  0x46   : > { %v191_v43 = vadd.f32 %v190_v39, %v189_v33  ;;  %v198_v44 = vadd.f32 %v197_v40, %v196_v34  ;;  %v208_v45 = vadd.f32 %v207_v41, %v206_v37  ;;  %v215_v46 = vadd.f32 %v214_v42, %v213_v38 }
  0x48   : > { %381 = vrcp.f32 %v191_v43  ;;  %v209_v47 = vrot.slane %v208_v45, 2  ;;  %v216_v48 = vrot.slane %v215_v46, 2  ;;  %vm225_vm1 = vweird.f32 %v191_v43 }
  0x49   : > { %383 = vrcp.f32 %v198_v44  ;;  %v229_v54 = vand.u32 2147483647, %v191_v43  ;;  %v231_v55 = vand.u32 2147483648, %v191_v43  ;;  %vm240_vm2 = vweird.f32 %v198_v44 }
  0x4a   : > { %v210_v49 = vadd.f32 %v209_v47, %v208_v45  ;;  %v217_v51 = vadd.f32 %v216_v48, %v215_v46  ;;  %385 = vlog2.f32 %v191_v43  ;;  %v246_v59 = vand.u32 2147483648, %v198_v44 }
  0x4b   : > { %387 = vlog2.f32 %v198_v44  ;;  %v244_v62 = vand.u32 2147483647, %v198_v44  ;;  %v232_v1 = vor.u32 1.1754944e-38, %v231_v55  ;;  %vm230_vm6 = vcmp.eq.f32.partialorder %v229_v54, 8.507059e+37 }
  0x4c   : > { %v211_v57 = vrot.slane %v210_v49, 1  ;;  %v218_v60 = vrot.slane %v217_v51, 1  ;;  %v247_v6 = vor.u32 1.1754944e-38, %v246_v59 }
  0x4d   : > { %vm245_vm8 = vcmp.eq.f32.partialorder %v244_v62, 8.507059e+37 }
  0x4e   : > { %v382_v50 = vpop.eup %381  ;;  %v212_v4 = vadd.f32 %v211_v57, %v210_v49  ;;  %v219_v7 = vadd.f32 %v218_v60, %v217_v51 }
  0x4f   : > { %v384_v52 = vpop.eup %383  ;;  %v221_v53 = vmul.f32 %v382_v50, %v191_v43  ;;  %vm226_vm3 = vweird.f32 %v382_v50 }
  0x50   : > { %v236_v56 = vmul.f32 %v384_v52, %v198_v44  ;;  %vm241_vm4 = vweird.f32 %v384_v52  ;;  %v386_v0 = vpop.eup %385  ;;  %vm227_vm5 = vmor %vm225_vm1, %vm226_vm3 }
  0x51   : > { %v222_v58 = vsub.f32 1.0, %v221_v53  ;;  %v388_v3 = vpop.eup %387  ;;  %vm242_vm7 = vmor %vm240_vm2, %vm241_vm4  ;;  %v251_v10 = vmul.f32 0.6931472, %v386_v0 }
  0x52   : > { %v237_v61 = vsub.f32 1.0, %v236_v56  ;;  %v253_v13 = vmul.f32 0.6931472, %v388_v3 }
  0x53   : > { %v223_v63 = vmul.f32 %v382_v50, %v222_v58 }
  0x54   : > { %v238_v2 = vmul.f32 %v384_v52, %v237_v61 }
  0x55   : > { %v224_v5 = vadd.f32 %v382_v50, %v223_v63 }
  0x56   : > { %v239_v8 = vadd.f32 %v384_v52, %v238_v2 }
  0x57   : > { %v228_v9 = vsel %vm227_vm5, %v382_v50, %v224_v5 }
  0x58   : > { %v233_v11 = vsel %vm230_vm6, %v232_v1, %v228_v9  ;;  %v243_v12 = vsel %vm242_vm7, %v384_v52, %v239_v8 }
  0x59   : > { %v234_v14 = vmul.f32 %v233_v11, %v212_v4  ;;  %v248_v15 = vsel %vm245_vm8, %v247_v6, %v243_v12 }
  0x5a   : > { %v249_v16 = vmul.f32 %v248_v15, %v219_v7 }
  0x5b   : > { %v254_v17 = vsub.f32 %v234_v14, %v251_v10 }
  0x5c   : > { %v255_v18 = vsub.f32 %v249_v16, %v253_v13 }
  0x5d   : > { %v257_v19 = vsel %vm256_vm9, %v254_v17, 0.0 }
  0x5e   : > { %v258_v20 = vsel %vm256_vm9, %v255_v18, 0.0 }
  0x5f   : > { %v259_v21 = vadd.f32 %v258_v20, %v257_v19 }
  0x61   : > { %260 = vadd.xlane.f32.xlu0 %v259_v21 }
  0xd4   : > { %v261_v22 = vpop.xlane.xlu0 %260 }
  0xd5   : > { %v262_v23 = vrot.slane %v261_v22, 4 }
  0xd7   : > { %v263_v24 = vadd.f32 %v262_v23, %v261_v22 }
  0xd9   : > { %v264_v25 = vrot.slane %v263_v24, 2 }
  0xdb   : > { %v265_v26 = vadd.f32 %v264_v25, %v263_v24 }
  0xdd   : > { %v266_v27 = vrot.slane %v265_v26, 1 }
  0xdf   : > { %v267_v28 = vadd.f32 %v266_v27, %v265_v26 }
  0xe1   : > { %353 = vpush %v267_v28 }
 0x112   : > { %s354_s14 = spop %353 }
 0x113   : > { %s269_s18 = ssub.f32 0.0, %s354_s14 }
 0x115   : > { %v270_v29 = vstv %s269_s18 }
 0x116   : > { %271 = vst [vmem:[%s148_s17] sm:$0x1] %v270_v29 }
 0x117 PF: > { %s11_s8 = sadd.s32 1, %s411_s8   ;;  %s471_s6 = smov %s407_s7 }
 0x118   : > { %p8_p5 = scmp.ge.s32.totalorder %s11_s8, 4   ;;  %s472_s7 = smov %s474_s9 }
 0x11a   :  { %10 = sbr.rel (!%p8_p5) target bundleno = 2 (0x2), region = 54 }

</bundles_post_ra>
